<compile_context>
chip_gen: v6e
topology: v6e:2x2x1
jax: 0.10.0
libtpu: 0.0.40
codegen_flags: <defaults>
</compile_context>

<pallas_src>
import jax
import jax.numpy as jnp
from jax.experimental import pallas as pl
from jax.experimental.pallas import tpu as pltpu


def _round_up(a: int, b: int) -> int:
    return (a + b - 1) // b * b


# ----------------------------------------------------------------------------
# Fused kernel factory
# ----------------------------------------------------------------------------
def _make_head_kernel(use_mask: bool, compute_loss: bool, num_labels: int):
    """(dropout-mask mul) -> Linear -> lane-dense logits store ->
    optional masked cross-entropy per-tile partial (sum, count)."""

    def kernel(*refs):
        it = iter(refs)
        x_ref = next(it)                                # (tile_n, H)
        m_ref = next(it) if use_mask else None          # (tile_n, H) pre-scaled keep mask
        w_ref = next(it)                                # (H, L_pad)
        b_ref = next(it)                                # (1, L_pad)
        lab_ref = next(it) if compute_loss else None    # (tile_n, 1) int32
        out_ref = next(it)                              # (tile_n, L_pad)
        part_ref = next(it) if compute_loss else None   # (1, 1, 128) f32

        x = x_ref[...]
        if use_mask:
            x = x * m_ref[...]                          # inverted dropout

        # MXU matmul in native input dtype, f32 accumulation.
        logits = jnp.dot(x, w_ref[...], preferred_element_type=jnp.float32)
        logits = logits + b_ref[...].astype(jnp.float32)
        out_ref[...] = logits.astype(out_ref.dtype)

        if compute_loss:
            labels = lab_ref[...]                                       # (tile_n, 1)
            col = jax.lax.broadcasted_iota(jnp.int32, logits.shape, 1)  # (tile_n, L_pad)
            # Exclude zero-padded label columns from the logsumexp.
            masked = jnp.where(col < num_labels, logits, jnp.float32(-1e30))
            mx = jnp.max(masked, axis=-1, keepdims=True)
            lse = jnp.log(jnp.sum(jnp.exp(masked - mx), axis=-1,
                                  keepdims=True)) + mx                  # (tile_n, 1)
            lab_logit = jnp.sum(jnp.where(col == labels, logits, 0.0),
                                axis=-1, keepdims=True)                 # (tile_n, 1)
            valid = labels != -100                                      # ignore_index
            per_tok = jnp.where(valid, lse - lab_logit, 0.0)
            loss_sum = jnp.sum(per_tok)
            cnt = jnp.sum(valid.astype(jnp.float32))
            # Pack (sum, count) into lanes 0/1 of this tile's partial block.
            lane = jax.lax.broadcasted_iota(jnp.int32, part_ref.shape, 2)
            part_ref[...] = jnp.where(lane == 0, loss_sum,
                                      jnp.where(lane == 1, cnt, 0.0))

    return kernel


# ----------------------------------------------------------------------------
# Module-equivalent wrapper
# ----------------------------------------------------------------------------
def token_classification_head(task_output, weight, bias, labels=None,
                              attention_mask=None, *, dropout_p=0.1,
                              training=False, seed=0):
    """Mirrors TokenClassificationHead.forward.

    task_output: [B, S, H]; weight: [num_labels, H]; bias: [num_labels]
    labels: [B, S] int (optional); attention_mask: [B, S] (optional)
    returns (logits [B, S, num_labels], loss scalar or None)
    """
    B, S, H = task_output.shape
    L = weight.shape[0]
    N = B * S

    tile_n = min(512, _round_up(N, 8))
    n_pad = _round_up(N, tile_n)
    grid = n_pad // tile_n
    l_pad = _round_up(L, 128)

    x = task_output.reshape(N, H)            # keep native dtype (no f32 cast pass)
    if n_pad != N:
        x = jnp.pad(x, ((0, n_pad - N), (0, 0)))

    # Lane-dense padded weight/bias.
    w_pad = jnp.pad(jnp.asarray(weight), ((0, l_pad - L), (0, 0)))
    w_t = w_pad.T.astype(x.dtype)                                   # (H, L_pad)
    b_pad = jnp.pad(jnp.asarray(bias, jnp.float32),
                    (0, l_pad - L)).reshape(1, l_pad)               # (1, L_pad)

    use_mask = bool(training and dropout_p > 0.0)
    compute_loss = labels is not None

    args = [x]
    in_specs = [pl.BlockSpec((tile_n, H), lambda i: (i, 0))]

    if use_mask:
        keep = jax.random.bernoulli(jax.random.PRNGKey(seed),
                                    1.0 - dropout_p, (n_pad, H))
        scale = jnp.asarray(1.0 / (1.0 - dropout_p), x.dtype)
        args.append(keep.astype(x.dtype) * scale)                   # pre-scaled mask
        in_specs.append(pl.BlockSpec((tile_n, H), lambda i: (i, 0)))

    args += [w_t, b_pad]
    in_specs += [pl.BlockSpec((H, l_pad), lambda i: (0, 0)),
                 pl.BlockSpec((1, l_pad), lambda i: (0, 0))]

    if compute_loss:
        lab = jnp.asarray(labels, jnp.int32).reshape(-1)
        if attention_mask is not None:
            # torch.where(active_loss, labels, ignore_index)
            lab = jnp.where(jnp.asarray(attention_mask).reshape(-1) == 1,
                            lab, -100)
        if n_pad != N:
            lab = jnp.pad(lab, (0, n_pad - N), constant_values=-100)
        args.append(lab.reshape(n_pad, 1))
        in_specs.append(pl.BlockSpec((tile_n, 1), lambda i: (i, 0)))

    out_dtype = task_output.dtype
    out_shapes = [jax.ShapeDtypeStruct((n_pad, l_pad), out_dtype)]
    out_specs = [pl.BlockSpec((tile_n, l_pad), lambda i: (i, 0))]
    if compute_loss:
        out_shapes.append(jax.ShapeDtypeStruct((grid, 1, 128), jnp.float32))
        out_specs.append(pl.BlockSpec((1, 1, 128), lambda i: (i, 0, 0)))

    kernel = _make_head_kernel(use_mask, compute_loss, L)

    outs = pl.pallas_call(
        kernel,
        grid=(grid,),
        in_specs=in_specs,
        out_specs=tuple(out_specs) if compute_loss else out_specs[0],
        out_shape=tuple(out_shapes) if compute_loss else out_shapes[0],
        compiler_params=pltpu.CompilerParams(
            dimension_semantics=("parallel",)),
    )(*args)

    if compute_loss:
        logits_pad, partials = outs
        # NOTE: like torch.nn.CrossEntropyLoss, this yields NaN if every
        # label is ignored (count == 0).
        loss = jnp.sum(partials[:, 0, 0]) / jnp.sum(partials[:, 0, 1])
    else:
        logits_pad = outs
        loss = None

    logits = logits_pad[:N, :L].reshape(B, S, L)
    return logits, loss


# ----------------------------------------------------------------------------
if __name__ == "__main__":
    B, S, H, NUM_LABELS = 2, 8, 32, 5

    key = jax.random.PRNGKey(0)
    k_x, k_w, k_lab, k_mask = jax.random.split(key, 4)

    # Deterministic "module init": weight ~ N(0, 0.02), bias = 0
    weight = 0.02 * jax.random.normal(k_w, (NUM_LABELS, H), dtype=jnp.float32)
    bias = jnp.zeros((NUM_LABELS,), dtype=jnp.float32)

    task_output = jax.random.normal(k_x, (B, S, H), dtype=jnp.float32)
    labels = jax.random.randint(k_lab, (B, S), 0, NUM_LABELS)
    attention_mask = (jax.random.uniform(k_mask, (B, S)) > 0.2).astype(jnp.int32)

    # Eval-mode forward (dropout identity), with labels + attention mask.
    logits, loss = token_classification_head(
        task_output, weight, bias, labels=labels,
        attention_mask=attention_mask, dropout_p=0.1, training=False)
    jax.block_until_ready((logits, loss))

    # Plain-JAX reference (eval mode).
    ref_logits = task_output.reshape(-1, H) @ weight.T + bias
    lab_flat = jnp.where(attention_mask.reshape(-1) == 1,
                         labels.reshape(-1), -100)
    lse = jax.nn.logsumexp(ref_logits, axis=-1)
    picked = jnp.take_along_axis(
        ref_logits, jnp.clip(lab_flat, 0, NUM_LABELS - 1)[:, None], axis=-1)[:, 0]
    valid = lab_flat != -100
    ref_loss = jnp.sum(jnp.where(valid, lse - picked, 0.0)) / jnp.sum(valid)

    assert jnp.allclose(logits.reshape(-1, NUM_LABELS), ref_logits,
                        atol=1e-5, rtol=1e-5)
    assert jnp.allclose(loss, ref_loss, atol=1e-5, rtol=1e-5)

    # Exercise the training path (wrapper-generated dropout mask) + loss.
    logits_tr, loss_tr = token_classification_head(
        task_output, weight, bias, labels=labels, dropout_p=0.1,
        training=True, seed=123)
    jax.block_until_ready((logits_tr, loss_tr))

    # Exercise the no-labels path (loss is None).
    logits_nl, loss_nl = token_classification_head(
        task_output, weight, bias, dropout_p=0.1, training=False)
    assert loss_nl is None
    jax.block_until_ready(logits_nl)

    print("KERNEL_OK")
</pallas_src>

<mosaic_0001>
module attributes {stable_mosaic.version = 11 : i64} {
  func.func @kernel(%arg0: i32, %arg1: memref<16x32xf32, #tpu.memory_space<vmem>>, %arg2: memref<32x128xf32, #tpu.memory_space<vmem>>, %arg3: memref<1x128xf32, #tpu.memory_space<vmem>>, %arg4: memref<16x1xi32, #tpu.memory_space<vmem>>, %arg5: memref<16x128xf32, #tpu.memory_space<vmem>>, %arg6: memref<1x1x128xf32, #tpu.memory_space<vmem>>) attributes {dimension_semantics = [#tpu.dimension_semantics<parallel>], iteration_bounds = array<i64: 1>, scalar_prefetch = 0 : i64, scratch_operands = 0 : i64, tpu.core_type = #tpu.core_type<tc>, window_params = [{transform_indices = @transform_0, window_bounds = array<i64: 16, 32>}, {pipeline_mode = #tpu.pipeline_mode<synchronous>, transform_indices = @transform_1, window_bounds = array<i64: 32, 128>}, {pipeline_mode = #tpu.pipeline_mode<synchronous>, transform_indices = @transform_2, window_bounds = array<i64: 1, 128>}, {transform_indices = @transform_3, window_bounds = array<i64: 16, 1>}, {transform_indices = @transform_4, window_bounds = array<i64: 16, 128>}, {transform_indices = @transform_5, window_bounds = array<i64: 1, 1, 128>}]} {
    %c0 = arith.constant 0 : index
    %c0_0 = arith.constant 0 : index
    %0 = vector.load %arg1[%c0, %c0_0] : memref<16x32xf32, #tpu.memory_space<vmem>>, vector<16x32xf32>
    %c0_1 = arith.constant 0 : index
    %c0_2 = arith.constant 0 : index
    %1 = vector.load %arg2[%c0_1, %c0_2] : memref<32x128xf32, #tpu.memory_space<vmem>>, vector<32x128xf32>
    %cst = arith.constant dense<0.000000e+00> : vector<16x128xf32>
    %2 = tpu.matmul %0, %1, %cst {dimension_numbers = #tpu.dot_dimension_numbers<[1], [0], [0], [1], [0, 0, 1, 1], [], []>} : vector<16x32xf32>, vector<32x128xf32>, vector<16x128xf32> -> vector<16x128xf32>
    %c0_3 = arith.constant 0 : index
    %c0_4 = arith.constant 0 : index
    %3 = vector.load %arg3[%c0_3, %c0_4] : memref<1x128xf32, #tpu.memory_space<vmem>>, vector<1x128xf32>
    %4 = vector.broadcast %3 : vector<1x128xf32> to vector<16x128xf32>
    %5 = arith.addf %2, %4 : vector<16x128xf32>
    %c0_5 = arith.constant 0 : index
    %c0_6 = arith.constant 0 : index
    %6 = vector.load %arg5[%c0_5, %c0_6] : memref<16x128xf32, #tpu.memory_space<vmem>>, vector<16x128xf32>
    tpu.vector_store %arg5[%c0_5, %c0_6], %5 {strides = array<i32>} : memref<16x128xf32, #tpu.memory_space<vmem>>, vector<16x128xf32>,
    %c0_7 = arith.constant 0 : index
    %c0_8 = arith.constant 0 : index
    %7 = vector.load %arg4[%c0_7, %c0_8] : memref<16x1xi32, #tpu.memory_space<vmem>>, vector<16x1xi32>
    %8 = tpu.iota {dimensions = array<i32: 1>} : vector<16x128xi32>
    %c5_i32 = arith.constant 5 : i32
    %9 = vector.broadcast %c5_i32 : i32 to vector<16x128xi32>
    %10 = arith.cmpi slt, %8, %9 : vector<16x128xi32>
    %cst_9 = arith.constant -1.000000e+30 : f32
    %11 = vector.broadcast %cst_9 : f32 to vector<16x128xf32>
    %12 = arith.select %10, %5, %11 : vector<16x128xi1>, vector<16x128xf32>
    %cst_10 = arith.constant dense<0xFF800000> : vector<16xf32>
    %13 = vector.multi_reduction <maximumf>, %12, %cst_10 [1] : vector<16x128xf32> to vector<16xf32>
    %14 = vector.shape_cast %13 : vector<16xf32> to vector<16x1xf32>
    %15 = vector.broadcast %14 : vector<16x1xf32> to vector<16x128xf32>
    %16 = arith.subf %12, %15 : vector<16x128xf32>
    %17 = math.exp %16 : vector<16x128xf32>
    %cst_11 = arith.constant dense<0.000000e+00> : vector<16xf32>
    %18 = vector.multi_reduction <add>, %17, %cst_11 [1] : vector<16x128xf32> to vector<16xf32>
    %19 = vector.shape_cast %18 : vector<16xf32> to vector<16x1xf32>
    %20 = math.log %19 : vector<16x1xf32>
    %21 = arith.addf %20, %14 : vector<16x1xf32>
    %22 = vector.broadcast %7 : vector<16x1xi32> to vector<16x128xi32>
    %23 = arith.cmpi eq, %8, %22 : vector<16x128xi32>
    %cst_12 = arith.constant 0.000000e+00 : f32
    %24 = vector.broadcast %cst_12 : f32 to vector<16x128xf32>
    %25 = arith.select %23, %5, %24 : vector<16x128xi1>, vector<16x128xf32>
    %cst_13 = arith.constant dense<0.000000e+00> : vector<16xf32>
    %26 = vector.multi_reduction <add>, %25, %cst_13 [1] : vector<16x128xf32> to vector<16xf32>
    %27 = vector.shape_cast %26 : vector<16xf32> to vector<16x1xf32>
    %c-100_i32 = arith.constant -100 : i32
    %28 = vector.broadcast %c-100_i32 : i32 to vector<16x1xi32>
    %29 = arith.cmpi ne, %7, %28 : vector<16x1xi32>
    %30 = arith.subf %21, %27 : vector<16x1xf32>
    %cst_14 = arith.constant 0.000000e+00 : f32
    %31 = vector.broadcast %cst_14 : f32 to vector<16x1xf32>
    %32 = arith.select %29, %30, %31 : vector<16x1xi1>, vector<16x1xf32>
    %33 = vector.shape_cast %32 : vector<16x1xf32> to vector<1x16x1xf32>
    %cst_15 = arith.constant dense<0.000000e+00> : vector<1xf32>
    %34 = vector.multi_reduction <add>, %33, %cst_15 [1, 2] : vector<1x16x1xf32> to vector<1xf32>
    %35 = vector.shape_cast %34 : vector<1xf32> to vector<1x1x1xf32>
    %36 = vector.extract %35[0, 0, 0] : f32 from vector<1x1x1xf32>
    %37 = arith.extui %29 : vector<16x1xi1> to vector<16x1xi32>
    %38 = arith.sitofp %37 : vector<16x1xi32> to vector<16x1xf32>
    %39 = vector.shape_cast %38 : vector<16x1xf32> to vector<1x16x1xf32>
    %cst_16 = arith.constant dense<0.000000e+00> : vector<1xf32>
    %40 = vector.multi_reduction <add>, %39, %cst_16 [1, 2] : vector<1x16x1xf32> to vector<1xf32>
    %41 = vector.shape_cast %40 : vector<1xf32> to vector<1x1x1xf32>
    %42 = vector.extract %41[0, 0, 0] : f32 from vector<1x1x1xf32>
    %43 = tpu.iota {dimensions = array<i32: 2>} : vector<1x1x128xi32>
    %c0_i32 = arith.constant 0 : i32
    %44 = vector.broadcast %c0_i32 : i32 to vector<1x1x128xi32>
    %45 = arith.cmpi eq, %43, %44 : vector<1x1x128xi32>
    %c1_i32 = arith.constant 1 : i32
    %46 = vector.broadcast %c1_i32 : i32 to vector<1x1x128xi32>
    %47 = arith.cmpi eq, %43, %46 : vector<1x1x128xi32>
    %cst_17 = arith.constant 0.000000e+00 : f32
    %48 = vector.broadcast %42 : f32 to vector<1x1x128xf32>
    %49 = vector.broadcast %cst_17 : f32 to vector<1x1x128xf32>
    %50 = arith.select %47, %48, %49 : vector<1x1x128xi1>, vector<1x1x128xf32>
    %51 = vector.broadcast %36 : f32 to vector<1x1x128xf32>
    %52 = arith.select %45, %51, %50 : vector<1x1x128xi1>, vector<1x1x128xf32>
    %c0_18 = arith.constant 0 : index
    %c0_19 = arith.constant 0 : index
    %c0_20 = arith.constant 0 : index
    %53 = vector.load %arg6[%c0_18, %c0_19, %c0_20] : memref<1x1x128xf32, #tpu.memory_space<vmem>>, vector<1x1x128xf32>
    tpu.vector_store %arg6[%c0_18, %c0_19, %c0_20], %52 {strides = array<i32>} : memref<1x1x128xf32, #tpu.memory_space<vmem>>, vector<1x1x128xf32>,
    return
  }
  func.func @transform_0(%arg0: i32) -> (i32, i32) {
    %c0_i32 = arith.constant 0 : i32
    %c0_i32_0 = arith.constant 0 : i32
    return %arg0, %c0_i32 : i32, i32
  }
  func.func @transform_1(%arg0: i32) -> (i32, i32) {
    %c0_i32 = arith.constant 0 : i32
    %c0_i32_0 = arith.constant 0 : i32
    %c0_i32_1 = arith.constant 0 : i32
    return %c0_i32, %c0_i32_0 : i32, i32
  }
  func.func @transform_2(%arg0: i32) -> (i32, i32) {
    %c0_i32 = arith.constant 0 : i32
    %c0_i32_0 = arith.constant 0 : i32
    %c0_i32_1 = arith.constant 0 : i32
    return %c0_i32, %c0_i32_0 : i32, i32
  }
  func.func @transform_3(%arg0: i32) -> (i32, i32) {
    %c0_i32 = arith.constant 0 : i32
    %c0_i32_0 = arith.constant 0 : i32
    return %arg0, %c0_i32 : i32, i32
  }
  func.func @transform_4(%arg0: i32) -> (i32, i32) {
    %c0_i32 = arith.constant 0 : i32
    %c0_i32_0 = arith.constant 0 : i32
    return %arg0, %c0_i32 : i32, i32
  }
  func.func @transform_5(%arg0: i32) -> (i32, i32, i32) {
    %c0_i32 = arith.constant 0 : i32
    %c0_i32_0 = arith.constant 0 : i32
    %c0_i32_1 = arith.constant 0 : i32
    return %arg0, %c0_i32, %c0_i32_0 : i32, i32, i32
  }
}

</mosaic_0001>

<bundles_post_ra>
// kernel: tpu_custom_call.1
= control target key start
LH: loop header
LB: loop body
LE: loop exit
PB: predicated region body
PF: predicated region fallthrough
CT: control target
= control target key end

     0   :  { %11 = vsyncpa [#allocation3], 0  ;;  %s451_s0 = inlined_call_operand.vmem [shape: f32[16,32], index: 0, kind: input, shape index: {}]   ;;  %s452_s1 = inlined_call_operand.hbm [shape: f32[32,128], index: 1, kind: input, shape index: {}]   ;;  %s453_s2 = inlined_call_operand.vmem [shape: f32[1,128], index: 2, kind: input, shape index: {}]   ;;  %s454_s3 = inlined_call_operand.vmem [shape: s32[16,1], index: 3, kind: input, shape index: {}]   ;;  %s455_s4 = inlined_call_operand.hbm [shape: f32[16,128], index: 4, kind: output, shape index: {0}]   ;;  %s456_s5 = inlined_call_operand.hbm [shape: f32[1,1,128], index: 5, kind: output, shape index: {1}]  }
   0x1   :  { %12 = vsyncpa [#allocation4], 0 }
   0x2   :  { %13 = vsyncpa [#allocation7], 0  ;;  %s355_s18 = smov [#allocation2]  }
   0x3   :  { %s21_s19 = sshll.u32 %s355_s18, 4  ;;  %s22_s19 = int_to_ptr.vmem [resolvable:$true] %s21_s19 }
   0x4   :  { %s297_s20 = scalar_lea.vmem %s22_s19, 512  ;;  %p302_p1 = scmp.lt.s32.totalorder %s22_s19, %s22_s19 }
   0x5   :  { %p298_p0 = scmp.ne.s32.totalorder %s22_s19, %s297_s20  ;;  %p303_p2 = scmp.lt.s32.totalorder %s297_s20, %s297_s20 }
   0x7   :  { %p304_p3 = por %p303_p2, %p302_p1 }
   0x9   :  { %p305_p4 = pnand %p304_p3, %p298_p0 }
   0xb   :  { %308 = shalt.err (!%p305_p4)
}
   0xc   :  { %s356_s21 = smov 128   ;;  %s357_s22 = smov 8  }
   0xd   :  { %27 = dma.hbm_to_vmem [thread:$0]  %s452_s1, 512, %s22_s19, [#allocation3], %s356_s21, %s356_s21, %s357_s22  }
   0xe   :  { %349 = dma.done.wait [#allocation3], 512  }
   0xf   :  { %350 = vsyncadd [#allocation3], 4294966784  ;;  %v358_v0 = vmov 0   ;;  %vm48_vm0 = vcmask 261120   ;;  %v40_v1 = vld [vmem:[#allocation2 + $0x18] sm:$0xff]  ;;  %v39_v2 = vld [vmem:[#allocation2 + $0x10] sm:$0xff]  ;;  %v134_v9 = vlaneseq }
  0x10   :  { %279 = vset.pattern.permute.xlu1 %v358_v0  ;;  %280 = vset.pattern.permute.xlu0 %v358_v0  ;;  %v35_v3 = vld [vmem:[%s451_s0] sm:$0xff]  ;;  %v38_v4 = vld [vmem:[#allocation2 + $0x8] sm:$0xff]  ;;  %v359_v30 = vmov 0.0   ;;  %vm179_vm6 = vcmask 7168  }
  0x11   :  { %257 = vmatprep.subr.mxu0 %v40_v1  ;;  %265 = vmatprep.mubr.msk.f32.mxu0 %vm48_vm0, %v35_v3  ;;  %v405_v5 = vld [vmem:[%s454_s3] sm:$0xff]  ;;  %v411_v7 = vld [vmem:[%s454_s3 + $0x8] sm:$0xff]  ;;  %v421_v11 = vand.u32 127, %v134_v9 }
  0x12   :  { %258 = vmatpush3.msra.mxu0 %v40_v1  ;;  %160 = vperm.xlu1 %279, %v405_v5   ;;  %v37_v6 = vld [vmem:[#allocation2] sm:$0xff]  ;;  %v36_v8 = vld [vmem:[%s451_s0 + $0x8] sm:$0xff]  ;;  %vm173_vm4 = vcmp.ne.s32.totalorder %v405_v5, 4294967196  ;;  %vm174_vm5 = vcmp.ne.s32.totalorder %v411_v7, 4294967196  ;;  %s360_s0 = smov [#allocation5]  }
  0x13   :  { %259 = vmatprep.subr.mxu0 %v39_v2  ;;  %v246_v10 = vld [vmem:[%s453_s2] ss:$0 sm:$0xff]  ;;  %vm136_vm1 = vcmp.lt.s32.totalorder %v421_v11, 5  ;;  %v249_v31 = vsel %vm173_vm4, 1.0, %v359_v30  ;;  %v250_v32 = vsel %vm174_vm5, 1.0, %v359_v30  ;;  %s220_s2 = sshll.u32 %s360_s0, 4  ;;  %s221_s2 = int_to_ptr.vmem [resolvable:$true] %s220_s2 }
  0x14   :  { %260 = vmatpush3.msra.mxu0 %v39_v2  ;;  %v196_v33 = vsel %vm179_vm6, %v249_v31, 0.0  ;;  %v197_v34 = vsel %vm179_vm6, %v250_v32, 0.0  ;;  %s309_s3 = scalar_lea.vmem %s221_s2, 256  ;;  %p314_p6 = scmp.lt.s32.totalorder %s221_s2, %s221_s2 }
  0x15   :  { %261 = vmatprep.subr.mxu0 %v38_v4  ;;  %v198_v35 = vadd.f32 %v197_v34, %v196_v33  ;;  %p310_p5 = scmp.ne.s32.totalorder %s221_s2, %s309_s3  ;;  %p315_p7 = scmp.lt.s32.totalorder %s309_s3, %s309_s3 }
  0x16   :  { %262 = vmatpush3.msra.mxu0 %v38_v4  ;;  %163 = vperm.xlu1 %279, %v411_v7  }
  0x17   :  { %263 = vmatprep.subr.mxu0 %v37_v6  ;;  %p316_p8 = por %p315_p7, %p314_p6 }
  0x18   :  { %264 = vmatpush3.msra.mxu0 %v37_v6 }
  0x19   :  { %266 = vmatmul.mubr.msk.f32.vlgmr.msra.gmra.mxu0 %vm48_vm0, %v36_v8  ;;  %p317_p9 = pnand %p316_p8, %p310_p5 }
  0x8d   :  { %v161_v24 = vpop.permute.xlu1 %160 }
  0x8e   :  { %vm165_vm2 = vcmp.eq.s32.totalorder %v421_v11, %v161_v24 }
  0x91   :  { %v164_v26 = vpop.permute.xlu1 %163 }
  0x92   :  { %vm166_vm3 = vcmp.eq.s32.totalorder %v421_v11, %v164_v26 }
  0xd9   :  { %v267_v12 = vpop.f32.mrf.mxu0 }
  0xda   :  { %v127_v13 = vadd.f32 %v267_v12, %v246_v10 }
  0xdb   :  { %v121_v14 = vpop.f32.mrf.mxu0 }
  0xdc   :  { %131 = vst [vmem:[#allocation5 + $0x8] sm:$0xff] %v127_v13  ;;  %v122_v15 = vadd.f32 %v246_v10, %v121_v14  ;;  %v138_v17 = vsel %vm136_vm1, %v127_v13, -1e+30  ;;  %v168_v29 = vsel %vm166_vm3, %v127_v13, 0.0 }
  0xde   :  { %130 = vst [vmem:[#allocation5] sm:$0xff] %v122_v15  ;;  %v137_v16 = vsel %vm136_vm1, %v122_v15, -1e+30  ;;  %v167_v28 = vsel %vm165_vm2, %v122_v15, 0.0 }
  0xdf   :  { %139 = vmax.xlane.f32.xlu0 %v137_v16 }
  0xe3   :  { %141 = vmax.xlane.f32.xlu0 %v138_v17 }
 0x168   :  { %v140_v18 = vpop.xlane.xlu0 %139 }
 0x169   :  { %v143_v19 = vsub.f32 %v137_v16, %v140_v18 }
 0x16b   :  { %v145_v20 = vmul.f32 1.442695, %v143_v19 }
 0x16c   :  { %v142_v21 = vpop.xlane.xlu0 %141 }
 0x16d   :  { %281 = vpow2.f32 %v145_v20  ;;  %v144_v22 = vsub.f32 %v138_v17, %v142_v21 }
 0x16f   :  { %v147_v23 = vmul.f32 1.442695, %v144_v22 }
 0x171   :  { %283 = vpow2.f32 %v147_v23 }
 0x17a   :  { %v282_v25 = vpop.eup %281 }
 0x17b   :  { %149 = vadd.xlane.f32.xlu0 %v282_v25 }
 0x17e   :  { %v284_v27 = vpop.eup %283 }
 0x17f   :  { %169 = vadd.xlane.f32.xlu0 %v167_v28  ;;  %151 = vadd.xlane.f32.xlu1 %v284_v27 }
 0x183   :  { %171 = vadd.xlane.f32.xlu0 %v168_v29 }
 0x204   :  { %v150_v36 = vpop.xlane.xlu0 %149 }
 0x205   :  { %285 = vlog2.f32 %v150_v36 }
 0x208   :  { %v152_v37 = vpop.xlane.xlu1 %151  ;;  %v170_v40 = vpop.xlane.xlu0 %169 }
 0x209   :  { %287 = vlog2.f32 %v152_v37 }
 0x20c   :  { %v172_v46 = vpop.xlane.xlu0 %171 }
 0x212   :  { %v286_v38 = vpop.eup %285 }
 0x213   :  { %v154_v39 = vmul.f32 0.6931472, %v286_v38 }
 0x215   :  { %v157_v41 = vadd.f32 %v154_v39, %v140_v18 }
 0x216   :  { %v288_v42 = vpop.eup %287 }
 0x217   :  { %v156_v43 = vmul.f32 0.6931472, %v288_v42  ;;  %v175_v44 = vsub.f32 %v157_v41, %v170_v40 }
 0x219   :  { %v158_v45 = vadd.f32 %v156_v43, %v142_v21  ;;  %v177_v47 = vsel %vm173_vm4, %v175_v44, 0.0 }
 0x21a   :  { %v180_v50 = vsel %vm179_vm6, %v177_v47, 0.0 }
 0x21b   :  { %v176_v48 = vsub.f32 %v158_v45, %v172_v46 }
 0x21d   :  { %v178_v49 = vsel %vm174_vm5, %v176_v48, 0.0 }
 0x21e   :  { %v181_v51 = vsel %vm179_vm6, %v178_v49, 0.0 }
 0x21f   :  { %v182_v52 = vadd.f32 %v181_v51, %v180_v50 }
 0x221   :  { %183 = vadd.xlane.f32.xlu0 %v182_v52 }
 0x225   :  { %199 = vadd.xlane.f32.xlu0 %v198_v35 }
 0x226   :  { %320 = shalt.err (!%p317_p9)
}
 0x227   :  { %226 = dma.vmem_to_hbm [thread:$0]  %s221_s2, 256, %s455_s4, [#allocation4], %s356_s21, %s356_s21, %s357_s22   ;;  %vm209_vm7 = vcmp.eq.s32.totalorder %v421_v11, 1  ;;  %vm208_vm8 = vcmp.eq.s32.totalorder %v421_v11, 0 }
 0x228   :  { %s361_s4 = smov [#allocation6]  }
 0x229   :  { %s233_s12 = sshll.u32 %s361_s4, 4  ;;  %s234_s12 = int_to_ptr.vmem [resolvable:$true] %s233_s12 }
 0x22a   :  { %s329_s14 = scalar_lea.vmem %s234_s12, 16  ;;  %s333_s15 = scalar_lea.vmem %s234_s12, 32 }
 0x22b   :  { %p330_p10 = scmp.ne.s32.totalorder %s234_s12, %s329_s14  ;;  %p334_p11 = scmp.lt.s32.totalorder %s234_s12, %s234_s12 }
 0x22c   :  { %p335_p12 = scmp.lt.s32.totalorder %s333_s15, %s329_s14 }
 0x22e   :  { %p336_p13 = por %p335_p12, %p334_p11 }
 0x230   :  { %p337_p0 = pnand %p336_p13, %p330_p10 }
 0x2aa   :  { %v184_v53 = vpop.xlane.xlu0 %183 }
 0x2ab   :  { %v185_v54 = vrot.slane %v184_v53, 4 }
 0x2ad   :  { %v186_v55 = vadd.f32 %v185_v54, %v184_v53 }
 0x2ae   :  { %v200_v56 = vpop.xlane.xlu0 %199 }
 0x2af   :  { %v187_v57 = vrot.slane %v186_v55, 2  ;;  %v201_v58 = vrot.slane %v200_v56, 4 }
 0x2b1   :  { %v202_v59 = vadd.f32 %v201_v58, %v200_v56  ;;  %v188_v60 = vadd.f32 %v187_v57, %v186_v55 }
 0x2b3   :  { %v203_v61 = vrot.slane %v202_v59, 2  ;;  %v189_v62 = vrot.slane %v188_v60, 1 }
 0x2b5   :  { %v204_v63 = vadd.f32 %v203_v61, %v202_v59  ;;  %v190_v0 = vadd.f32 %v189_v62, %v188_v60 }
 0x2b7   :  { %268 = vpush %v190_v0  ;;  %v205_v1 = vrot.slane %v204_v63, 1 }
 0x2b9   :  { %v206_v2 = vadd.f32 %v205_v1, %v204_v63 }
 0x2bb   :  { %270 = vpush %v206_v2 }
 0x2e8   :  { %s269_s11 = spop %268 }
 0x2e9   :  { %v212_v4 = vstv %s269_s11 }
 0x2ec   :  { %s271_s13 = spop %270 }
 0x2ed   :  { %v210_v3 = vstv %s271_s13 }
 0x2ee   :  { %v211_v5 = vsel %vm209_vm7, %v210_v3, 0.0 }
 0x2ef   :  { %v213_v6 = vsel %vm208_vm8, %v212_v4, %v211_v5 }
 0x2f0   :  { %214 = vst [vmem:[#allocation6] sm:$0x1] %v213_v6 }
 0x2f1   :  { %340 = shalt.err (!%p337_p0)
}
 0x2f2   :  { %236 = dma.vmem_to_hbm [thread:$0]  %s234_s12, 16, %s456_s5, [#allocation7]  }
 0x2f3   :  { %351 = dma.done.wait [#allocation4], 256  }
 0x2f4   :  { %352 = vsyncadd [#allocation4], 4294967040 }
 0x2f5   :  { %353 = dma.done.wait [#allocation7], 16  }
 0x2f6   :  { %354 = vsyncadd [#allocation7], 4294967280 }
 0x2f7   :  { %243 = vsyncpa [#allocation3], 1 }
 0x2f8   :  { %244 = vsyncpa [#allocation4], 1 }
 0x2f9   :  { %245 = vsyncpa [#allocation7], 1 }

</bundles_post_ra>
